<compile_context>
chip_gen: v6e
topology: v6e:2x2x1
jax: 0.10.0
libtpu: 0.0.40
codegen_flags: <defaults>
</compile_context>

<pallas_src>
import functools
import math

import jax
import jax.numpy as jnp
from jax.experimental import pallas as pl
from jax.experimental.pallas import tpu as pltpu

_LANES = 128
_MIB = 1024 * 1024


# ----------------------------- helpers --------------------------------------
def _round_up(x, m):
    return ((x + m - 1) // m) * m


def _ceil_div(a, b):
    return -(-a // b)


def _pad_rows(a, new_rows):
    if a.shape[0] == new_rows:
        return a
    return jnp.pad(a, [(0, new_rows - a.shape[0])] + [(0, 0)] * (a.ndim - 1))


def _pack_gate_cols(a, H, ncols, WB):
    """Re-lay the last dim (= 4*H, gates [i|j|f|o] contiguous) as `ncols` column
    blocks of WB lanes each, gate-interleaved per block: block j holds
    [i_j | j_j | f_j | o_j], each H//ncols wide (zero-padded up to WB when
    4*(H//ncols) < WB)."""
    lead = a.shape[:-1]
    tw = H // ncols
    a4 = a.reshape(lead + (4, ncols, tw))
    a4 = jnp.moveaxis(a4, -3, -2)                       # (..., ncols, 4, tw)
    a4 = a4.reshape(lead + (ncols, 4 * tw))
    if 4 * tw < WB:
        a4 = jnp.pad(a4, [(0, 0)] * (len(lead) + 1) + [(0, WB - 4 * tw)])
    return a4.reshape(lead + (ncols * WB,))


def _vmem_capacity_bytes():
    try:
        return int(pltpu.get_tpu_info().vmem_capacity_bytes)
    except Exception:
        return 64 * _MIB          # conservative (v7x-sized) fallback


def _choose_tm(m, block_rows):
    """Row-tile size: <= block_rows, multiple of 8, and an even tile count when
    there is more than one tile (megacore tail balance)."""
    if m <= block_rows:
        return _round_up(m, 8)
    tm = _round_up(block_rows, 8)
    g = _ceil_div(m, tm)
    if g > 1 and g % 2 == 1:
        tm2 = _round_up(_ceil_div(m, g + 1), 8)
        if tm2 >= 8 and tm2 * (g + 1) <= tm * g:
            tm = tm2
    return tm


# ----------------------------- kernel ----------------------------------------
def _milstm_kernel(x_ref, h_ref, c_ref, w1_ref, w2_ref, p_ref,
                   new_c_ref, new_h_ref, *, forget_bias, gate_stride,
                   compute_dtype):
    # MXU matmuls: activations cast to bf16 *inside* the kernel (streamed at
    # their HBM dtype), accumulate in f32.
    wx1 = jnp.dot(x_ref[...].astype(compute_dtype), w1_ref[...],
                  preferred_element_type=jnp.float32)           # (TM, WB)
    wx2 = jnp.dot(h_ref[...].astype(compute_dtype), w2_ref[...],
                  preferred_element_type=jnp.float32)           # (TM, WB)
    p = p_ref[...].astype(jnp.float32)                          # (4, WB)

    gs = gate_stride

    def mi_gate(g):
        sl = slice(g * gs, (g + 1) * gs)
        a, b = wx1[:, sl], wx2[:, sl]
        alpha, b1, b2, bias = p[0:1, sl], p[1:2, sl], p[2:3, sl], p[3:4, sl]
        # alpha*a*b + b1*a + b2*b + bias, factored: 3 mul + 2 add per element.
        return a * (alpha * b + b1) + (b2 * b + bias)

    gi, gj, gf, go = mi_gate(0), mi_gate(1), mi_gate(2), mi_gate(3)

    def sigm(v):                 # sigmoid via a single EUP tanh (not exp+recip)
        return 0.5 * (jnp.tanh(0.5 * v) + 1.0)

    c = c_ref[...].astype(jnp.float32)
    # Matches the PyTorch module: new_c = c*sigma(f+fb) + sigma(i + tanh(j))
    new_c = c * sigm(gf + forget_bias) + sigm(gi + jnp.tanh(gj))
    new_h = jnp.tanh(new_c) * sigm(go)

    new_c_ref[...] = new_c.astype(new_c_ref.dtype)
    new_h_ref[...] = new_h.astype(new_h_ref.dtype)


# ----------------------------- wrapper ----------------------------------------
def milstm_cell_pallas(inputs, c, h, params, *, forget_bias=0.0,
                       compute_dtype=jnp.bfloat16, h_dtype=jnp.bfloat16,
                       block_rows=None, col_block=None):
    """inputs: (B, L, D); c, h: (B, L, H). Returns (new_h, (new_c, new_h)).

    new_c keeps c's dtype (recurrent-state precision); new_h is emitted in
    `h_dtype` (bf16 by default; pass h_dtype=None to match h's dtype)."""
    w1, w2, alphas, b1, b2, biases = params
    B, L, D = inputs.shape
    H = c.shape[-1]
    M = B * L
    h_dtype = jnp.dtype(h.dtype if h_dtype is None else h_dtype)
    c_dtype = jnp.dtype(c.dtype)
    cd_bytes = jnp.dtype(compute_dtype).itemsize

    vmem_cap = _vmem_capacity_bytes()
    if block_rows is None:
        block_rows = 512 if vmem_cap >= 96 * _MIB else 256

    TM = _choose_tm(M, block_rows)
    MP = _round_up(M, TM)
    grid_rows = MP // TM

    # ---- gate-column layout --------------------------------------------------
    if col_block is None and H % _LANES == 0:
        w_bytes = (D + H) * 4 * H * cd_bytes
        budget = vmem_cap // 4
        if w_bytes > budget:
            nb = min(_ceil_div(w_bytes, budget), H // _LANES)
            while (H // _LANES) % nb:
                nb += 1
            col_block = H // nb
    if col_block is not None:
        if H % col_block or col_block % _LANES:
            raise ValueError("col_block must be a multiple of 128 dividing H")
        ncols, GS = H // col_block, col_block
        WB = 4 * col_block
    else:
        ncols, GS = 1, H
        WB = _round_up(4 * H, _LANES)

    # ---- host-side plumbing (weights only; activations stream unpadded) ------
    x2 = _pad_rows(inputs.reshape(M, D), MP)
    h2 = _pad_rows(h.reshape(M, H), MP)
    c2 = _pad_rows(c.reshape(M, H), MP)
    w1p = _pack_gate_cols(w1, H, ncols, WB).astype(compute_dtype)   # (D, ncols*WB)
    w2p = _pack_gate_cols(w2, H, ncols, WB).astype(compute_dtype)   # (H, ncols*WB)
    pvec = jnp.stack([
        _pack_gate_cols(alphas.astype(jnp.float32), H, ncols, WB),
        _pack_gate_cols(b1.astype(jnp.float32), H, ncols, WB),
        _pack_gate_cols(b2.astype(jnp.float32), H, ncols, WB),
        _pack_gate_cols(biases.astype(jnp.float32), H, ncols, WB),
    ], axis=0)                                                      # (4, ncols*WB)

    # ---- VMEM budget & cost hint ----------------------------------------------
    wbuf = 1 if ncols == 1 else 2
    x_b = jnp.dtype(inputs.dtype).itemsize
    h_b = jnp.dtype(h.dtype).itemsize
    c_b = c_dtype.itemsize
    vmem_need = (
        2 * TM * (D * x_b + H * h_b + GS * c_b)                  # streamed x, h, c
        + 2 * TM * GS * (c_dtype.itemsize + h_dtype.itemsize)    # outputs
        + wbuf * ((D + H) * WB * cd_bytes + 4 * WB * 4)          # weights + params
        + (2 * TM * WB + 8 * TM * GS) * 4                        # wx1/wx2 + temps
    )
    vmem_limit = min(int(0.9 * vmem_cap), max(32 * _MIB, int(1.5 * vmem_need)))

    cost = pl.CostEstimate(
        flops=2 * M * (D + H) * 4 * H + 30 * M * H,
        transcendentals=5 * M * H,
        bytes_accessed=(M * (D * x_b + H * h_b + H * c_b)
                        + M * H * (c_dtype.itemsize + h_dtype.itemsize)
                        + ((D + H) * 4 * H * cd_bytes + 16 * H * 4)
                        * (1 if ncols == 1 else grid_rows)),
    )

    kernel = functools.partial(_milstm_kernel, forget_bias=float(forget_bias),
                               gate_stride=GS, compute_dtype=compute_dtype)

    def _build(single_buffer_consts):
        const_kw = ({"pipeline_mode": pl.Buffered(buffer_count=1)}
                    if single_buffer_consts else {})
        grid_spec = pltpu.PrefetchScalarGridSpec(
            num_scalar_prefetch=0,
            grid=(grid_rows, ncols),
            in_specs=[
                pl.BlockSpec((TM, D), lambda i, j: (i, 0)),               # x rows
                pl.BlockSpec((TM, H), lambda i, j: (i, 0)),               # h rows
                pl.BlockSpec((TM, GS), lambda i, j: (i, j)),              # c slab
                pl.BlockSpec((D, WB), lambda i, j: (0, j), **const_kw),   # w1
                pl.BlockSpec((H, WB), lambda i, j: (0, j), **const_kw),   # w2
                pl.BlockSpec((4, WB), lambda i, j: (0, j), **const_kw),   # params
            ],
            out_specs=[
                pl.BlockSpec((TM, GS), lambda i, j: (i, j)),              # new_c
                pl.BlockSpec((TM, GS), lambda i, j: (i, j)),              # new_h
            ],
        )
        return pl.pallas_call(
            kernel,
            out_shape=(jax.ShapeDtypeStruct((MP, H), c_dtype),
                       jax.ShapeDtypeStruct((MP, H), h_dtype)),
            grid_spec=grid_spec,
            compiler_params=pltpu.CompilerParams(
                dimension_semantics=("parallel", "arbitrary"),
                vmem_limit_bytes=int(vmem_limit)),
            cost_estimate=cost,
        )

    args = (x2, h2, c2, w1p, w2p, pvec)
    try:
        new_c2, new_h2 = _build(single_buffer_consts=(ncols == 1))(*args)
    except Exception:
        # Compat fallback if this jax build rejects pl.Buffered(1) for
        # grid-invariant operands (costs one extra resident weight buffer).
        new_c2, new_h2 = _build(single_buffer_consts=False)(*args)

    new_c = new_c2[:M].reshape(B, L, H)
    new_h = new_h2[:M].reshape(B, L, H)
    return new_h, (new_c, new_h)


# ----------------------------- init & reference -------------------------------
def init_params(key, input_size, num_units,
                bias_start=0.0, alpha_start=1.0, beta_start=1.0):
    """Deterministic init mirroring MultiplicativeIntegration.reset_parameters."""
    G = 4 * num_units
    total_in = input_size + num_units
    bound = math.sqrt(6.0 / (total_in + G))          # xavier_uniform_, gain=1
    weights = jax.random.uniform(key, (total_in, G), jnp.float32,
                                 minval=-bound, maxval=bound)
    w1 = weights[:input_size]                        # (input_size, 4H)
    w2 = weights[input_size:]                        # (num_units, 4H)
    alphas = jnp.full((G,), alpha_start, jnp.float32)
    betas = jnp.full((2 * G,), beta_start, jnp.float32)
    b1, b2 = betas[:G], betas[G:]
    biases = jnp.full((G,), bias_start, jnp.float32)
    return w1, w2, alphas, b1, b2, biases


def milstm_cell_ref(inputs, c, h, params, *, forget_bias=0.0, compute_dtype=None):
    """Pure-JAX reference matching the PyTorch forward.

    compute_dtype=None  -> full f32 (exact module semantics)
    compute_dtype=bf16  -> bf16 matmul operands, f32 accumulation (matches the
                           kernel's MXU precision)."""
    w1, w2, alphas, b1, b2, biases = params
    if compute_dtype is not None:
        xm, hm = inputs.astype(compute_dtype), h.astype(compute_dtype)
        w1m, w2m = w1.astype(compute_dtype), w2.astype(compute_dtype)
    else:
        xm, hm, w1m, w2m = inputs, h, w1, w2
    wx1 = jnp.dot(xm, w1m, preferred_element_type=jnp.float32)
    wx2 = jnp.dot(hm, w2m, preferred_element_type=jnp.float32)
    res = alphas * wx1 * wx2 + b1 * wx1 + b2 * wx2 + biases
    H = c.shape[-1]
    i, j, f, o = (res[..., 0:H], res[..., H:2 * H],
                  res[..., 2 * H:3 * H], res[..., 3 * H:4 * H])
    new_c = c * jax.nn.sigmoid(f + forget_bias) + jax.nn.sigmoid(i + jnp.tanh(j))
    new_h = jnp.tanh(new_c) * jax.nn.sigmoid(o)
    return new_h, (new_c, new_h)


# ----------------------------- test --------------------------------------------
if __name__ == "__main__":
    forget_bias = 0.0
    key = jax.random.PRNGKey(0)

    def run_case(B, L, input_size, num_units, **kw):
        k = jax.random.fold_in(key, B * 100000 + L * 100 + num_units)
        k_w, k_x, k_c, k_h = jax.random.split(k, 4)
        params = init_params(k_w, input_size, num_units)
        inputs = jax.random.normal(k_x, (B, L, input_size), jnp.float32)
        c0 = jax.random.normal(k_c, (B, L, num_units), jnp.float32)
        h0 = jax.random.normal(k_h, (B, L, num_units), jnp.float32)

        new_h, (new_c, _) = milstm_cell_pallas(inputs, c0, h0, params,
                                               forget_bias=forget_bias, **kw)
        jax.block_until_ready((new_h, new_c))
        new_h32 = new_h.astype(jnp.float32)

        # Reference with matched matmul precision (bf16 operands, f32 accum).
        ref_h, (ref_c, _) = milstm_cell_ref(inputs, c0, h0, params,
                                            forget_bias=forget_bias,
                                            compute_dtype=jnp.bfloat16)
        assert jnp.allclose(new_c, ref_c, atol=5e-3, rtol=5e-3), "c mismatch (bf16 ref)"
        assert jnp.allclose(new_h32, ref_h, atol=1e-2, rtol=1e-2), "h mismatch (bf16 ref)"

        # Full-f32 module semantics; looser tol absorbs bf16 matmul/output rounding.
        ref_h32, (ref_c32, _) = milstm_cell_ref(inputs, c0, h0, params,
                                                forget_bias=forget_bias)
        assert jnp.allclose(new_c, ref_c32, atol=5e-2, rtol=5e-2), "c mismatch (f32 ref)"
        assert jnp.allclose(new_h32, ref_h32, atol=5e-2, rtol=5e-2), "h mismatch (f32 ref)"

    # Small shape implied by the module (features on dim=2); H<128 exercises the
    # combined-gate (no per-gate padding) layout.
    run_case(B=2, L=4, input_size=32, num_units=32)
    # Multi-row-tile shape: exercises row tiling, ragged row padding, pipelining.
    run_case(B=4, L=96, input_size=32, num_units=32, block_rows=256)
    # Hidden-column-blocking path (v7x big-weights layout), forced via col_block.
    run_case(B=2, L=8, input_size=64, num_units=256, col_block=128)

    print("KERNEL_OK")
</pallas_src>

<mosaic_0001>
module attributes {stable_mosaic.version = 11 : i64} {
  func.func @_milstm_kernel(%arg0: i32, %arg1: i32, %arg2: memref<8x32xf32, #tpu.memory_space<vmem>>, %arg3: memref<8x32xf32, #tpu.memory_space<vmem>>, %arg4: memref<8x32xf32, #tpu.memory_space<vmem>>, %arg5: memref<32x128xbf16, #tpu.memory_space<vmem>>, %arg6: memref<32x128xbf16, #tpu.memory_space<vmem>>, %arg7: memref<4x128xf32, #tpu.memory_space<vmem>>, %arg8: memref<8x32xf32, #tpu.memory_space<vmem>>, %arg9: memref<8x32xbf16, #tpu.memory_space<vmem>>) attributes {dimension_semantics = [#tpu.dimension_semantics<parallel>, #tpu.dimension_semantics<arbitrary>], iteration_bounds = array<i64: 1, 1>, scalar_prefetch = 0 : i64, scratch_operands = 0 : i64, tpu.core_type = #tpu.core_type<tc>, window_params = [{transform_indices = @transform_0, window_bounds = array<i64: 8, 32>}, {transform_indices = @transform_1, window_bounds = array<i64: 8, 32>}, {transform_indices = @transform_2, window_bounds = array<i64: 8, 32>}, {pipeline_mode = #tpu.pipeline_mode<synchronous>, transform_indices = @transform_3, window_bounds = array<i64: 32, 128>}, {pipeline_mode = #tpu.pipeline_mode<synchronous>, transform_indices = @transform_4, window_bounds = array<i64: 32, 128>}, {pipeline_mode = #tpu.pipeline_mode<synchronous>, transform_indices = @transform_5, window_bounds = array<i64: 4, 128>}, {transform_indices = @transform_6, window_bounds = array<i64: 8, 32>}, {transform_indices = @transform_7, window_bounds = array<i64: 8, 32>}]} {
    %c0 = arith.constant 0 : index
    %c0_0 = arith.constant 0 : index
    %0 = vector.load %arg2[%c0, %c0_0] : memref<8x32xf32, #tpu.memory_space<vmem>>, vector<8x32xf32>
    %1 = arith.truncf %0 : vector<8x32xf32> to vector<8x32xbf16>
    %c0_1 = arith.constant 0 : index
    %c0_2 = arith.constant 0 : index
    %2 = vector.load %arg5[%c0_1, %c0_2] : memref<32x128xbf16, #tpu.memory_space<vmem>>, vector<32x128xbf16>
    %cst = arith.constant dense<0.000000e+00> : vector<8x128xf32>
    %3 = tpu.matmul %1, %2, %cst {dimension_numbers = #tpu.dot_dimension_numbers<[1], [0], [0], [1], [0, 0, 1, 1], [], []>} : vector<8x32xbf16>, vector<32x128xbf16>, vector<8x128xf32> -> vector<8x128xf32>
    %c0_3 = arith.constant 0 : index
    %c0_4 = arith.constant 0 : index
    %4 = vector.load %arg3[%c0_3, %c0_4] : memref<8x32xf32, #tpu.memory_space<vmem>>, vector<8x32xf32>
    %5 = arith.truncf %4 : vector<8x32xf32> to vector<8x32xbf16>
    %c0_5 = arith.constant 0 : index
    %c0_6 = arith.constant 0 : index
    %6 = vector.load %arg6[%c0_5, %c0_6] : memref<32x128xbf16, #tpu.memory_space<vmem>>, vector<32x128xbf16>
    %cst_7 = arith.constant dense<0.000000e+00> : vector<8x128xf32>
    %7 = tpu.matmul %5, %6, %cst_7 {dimension_numbers = #tpu.dot_dimension_numbers<[1], [0], [0], [1], [0, 0, 1, 1], [], []>} : vector<8x32xbf16>, vector<32x128xbf16>, vector<8x128xf32> -> vector<8x128xf32>
    %c0_8 = arith.constant 0 : index
    %c0_9 = arith.constant 0 : index
    %8 = vector.load %arg7[%c0_8, %c0_9] : memref<4x128xf32, #tpu.memory_space<vmem>>, vector<4x128xf32>
    %9 = vector.extract_strided_slice %3 {offsets = [0, 0], sizes = [8, 32], strides = [1, 1]} : vector<8x128xf32> to vector<8x32xf32>
    %10 = vector.extract_strided_slice %7 {offsets = [0, 0], sizes = [8, 32], strides = [1, 1]} : vector<8x128xf32> to vector<8x32xf32>
    %11 = vector.extract_strided_slice %8 {offsets = [0, 0], sizes = [1, 32], strides = [1, 1]} : vector<4x128xf32> to vector<1x32xf32>
    %12 = vector.extract_strided_slice %8 {offsets = [1, 0], sizes = [1, 32], strides = [1, 1]} : vector<4x128xf32> to vector<1x32xf32>
    %13 = vector.extract_strided_slice %8 {offsets = [2, 0], sizes = [1, 32], strides = [1, 1]} : vector<4x128xf32> to vector<1x32xf32>
    %14 = vector.extract_strided_slice %8 {offsets = [3, 0], sizes = [1, 32], strides = [1, 1]} : vector<4x128xf32> to vector<1x32xf32>
    %15 = vector.broadcast %11 : vector<1x32xf32> to vector<8x32xf32>
    %16 = arith.mulf %15, %10 : vector<8x32xf32>
    %17 = vector.broadcast %12 : vector<1x32xf32> to vector<8x32xf32>
    %18 = arith.addf %16, %17 : vector<8x32xf32>
    %19 = arith.mulf %9, %18 : vector<8x32xf32>
    %20 = vector.broadcast %13 : vector<1x32xf32> to vector<8x32xf32>
    %21 = arith.mulf %20, %10 : vector<8x32xf32>
    %22 = vector.broadcast %14 : vector<1x32xf32> to vector<8x32xf32>
    %23 = arith.addf %21, %22 : vector<8x32xf32>
    %24 = arith.addf %19, %23 : vector<8x32xf32>
    %25 = vector.extract_strided_slice %3 {offsets = [0, 32], sizes = [8, 32], strides = [1, 1]} : vector<8x128xf32> to vector<8x32xf32>
    %26 = vector.extract_strided_slice %7 {offsets = [0, 32], sizes = [8, 32], strides = [1, 1]} : vector<8x128xf32> to vector<8x32xf32>
    %27 = vector.extract_strided_slice %8 {offsets = [0, 32], sizes = [1, 32], strides = [1, 1]} : vector<4x128xf32> to vector<1x32xf32>
    %28 = vector.extract_strided_slice %8 {offsets = [1, 32], sizes = [1, 32], strides = [1, 1]} : vector<4x128xf32> to vector<1x32xf32>
    %29 = vector.extract_strided_slice %8 {offsets = [2, 32], sizes = [1, 32], strides = [1, 1]} : vector<4x128xf32> to vector<1x32xf32>
    %30 = vector.extract_strided_slice %8 {offsets = [3, 32], sizes = [1, 32], strides = [1, 1]} : vector<4x128xf32> to vector<1x32xf32>
    %31 = vector.broadcast %27 : vector<1x32xf32> to vector<8x32xf32>
    %32 = arith.mulf %31, %26 : vector<8x32xf32>
    %33 = vector.broadcast %28 : vector<1x32xf32> to vector<8x32xf32>
    %34 = arith.addf %32, %33 : vector<8x32xf32>
    %35 = arith.mulf %25, %34 : vector<8x32xf32>
    %36 = vector.broadcast %29 : vector<1x32xf32> to vector<8x32xf32>
    %37 = arith.mulf %36, %26 : vector<8x32xf32>
    %38 = vector.broadcast %30 : vector<1x32xf32> to vector<8x32xf32>
    %39 = arith.addf %37, %38 : vector<8x32xf32>
    %40 = arith.addf %35, %39 : vector<8x32xf32>
    %41 = vector.extract_strided_slice %3 {offsets = [0, 64], sizes = [8, 32], strides = [1, 1]} : vector<8x128xf32> to vector<8x32xf32>
    %42 = vector.extract_strided_slice %7 {offsets = [0, 64], sizes = [8, 32], strides = [1, 1]} : vector<8x128xf32> to vector<8x32xf32>
    %43 = vector.extract_strided_slice %8 {offsets = [0, 64], sizes = [1, 32], strides = [1, 1]} : vector<4x128xf32> to vector<1x32xf32>
    %44 = vector.extract_strided_slice %8 {offsets = [1, 64], sizes = [1, 32], strides = [1, 1]} : vector<4x128xf32> to vector<1x32xf32>
    %45 = vector.extract_strided_slice %8 {offsets = [2, 64], sizes = [1, 32], strides = [1, 1]} : vector<4x128xf32> to vector<1x32xf32>
    %46 = vector.extract_strided_slice %8 {offsets = [3, 64], sizes = [1, 32], strides = [1, 1]} : vector<4x128xf32> to vector<1x32xf32>
    %47 = vector.broadcast %43 : vector<1x32xf32> to vector<8x32xf32>
    %48 = arith.mulf %47, %42 : vector<8x32xf32>
    %49 = vector.broadcast %44 : vector<1x32xf32> to vector<8x32xf32>
    %50 = arith.addf %48, %49 : vector<8x32xf32>
    %51 = arith.mulf %41, %50 : vector<8x32xf32>
    %52 = vector.broadcast %45 : vector<1x32xf32> to vector<8x32xf32>
    %53 = arith.mulf %52, %42 : vector<8x32xf32>
    %54 = vector.broadcast %46 : vector<1x32xf32> to vector<8x32xf32>
    %55 = arith.addf %53, %54 : vector<8x32xf32>
    %56 = arith.addf %51, %55 : vector<8x32xf32>
    %57 = vector.extract_strided_slice %3 {offsets = [0, 96], sizes = [8, 32], strides = [1, 1]} : vector<8x128xf32> to vector<8x32xf32>
    %58 = vector.extract_strided_slice %7 {offsets = [0, 96], sizes = [8, 32], strides = [1, 1]} : vector<8x128xf32> to vector<8x32xf32>
    %59 = vector.extract_strided_slice %8 {offsets = [0, 96], sizes = [1, 32], strides = [1, 1]} : vector<4x128xf32> to vector<1x32xf32>
    %60 = vector.extract_strided_slice %8 {offsets = [1, 96], sizes = [1, 32], strides = [1, 1]} : vector<4x128xf32> to vector<1x32xf32>
    %61 = vector.extract_strided_slice %8 {offsets = [2, 96], sizes = [1, 32], strides = [1, 1]} : vector<4x128xf32> to vector<1x32xf32>
    %62 = vector.extract_strided_slice %8 {offsets = [3, 96], sizes = [1, 32], strides = [1, 1]} : vector<4x128xf32> to vector<1x32xf32>
    %63 = vector.broadcast %59 : vector<1x32xf32> to vector<8x32xf32>
    %64 = arith.mulf %63, %58 : vector<8x32xf32>
    %65 = vector.broadcast %60 : vector<1x32xf32> to vector<8x32xf32>
    %66 = arith.addf %64, %65 : vector<8x32xf32>
    %67 = arith.mulf %57, %66 : vector<8x32xf32>
    %68 = vector.broadcast %61 : vector<1x32xf32> to vector<8x32xf32>
    %69 = arith.mulf %68, %58 : vector<8x32xf32>
    %70 = vector.broadcast %62 : vector<1x32xf32> to vector<8x32xf32>
    %71 = arith.addf %69, %70 : vector<8x32xf32>
    %72 = arith.addf %67, %71 : vector<8x32xf32>
    %c0_10 = arith.constant 0 : index
    %c0_11 = arith.constant 0 : index
    %73 = vector.load %arg4[%c0_10, %c0_11] : memref<8x32xf32, #tpu.memory_space<vmem>>, vector<8x32xf32>
    %cst_12 = arith.constant 0.000000e+00 : f32
    %74 = vector.broadcast %cst_12 : f32 to vector<8x32xf32>
    %75 = arith.addf %56, %74 : vector<8x32xf32>
    %cst_13 = arith.constant 5.000000e-01 : f32
    %76 = vector.broadcast %cst_13 : f32 to vector<8x32xf32>
    %77 = arith.mulf %76, %75 : vector<8x32xf32>
    %78 = math.tanh %77 : vector<8x32xf32>
    %cst_14 = arith.constant 1.000000e+00 : f32
    %79 = vector.broadcast %cst_14 : f32 to vector<8x32xf32>
    %80 = arith.addf %78, %79 : vector<8x32xf32>
    %cst_15 = arith.constant 5.000000e-01 : f32
    %81 = vector.broadcast %cst_15 : f32 to vector<8x32xf32>
    %82 = arith.mulf %81, %80 : vector<8x32xf32>
    %83 = arith.mulf %73, %82 : vector<8x32xf32>
    %84 = math.tanh %40 : vector<8x32xf32>
    %85 = arith.addf %24, %84 : vector<8x32xf32>
    %cst_16 = arith.constant 5.000000e-01 : f32
    %86 = vector.broadcast %cst_16 : f32 to vector<8x32xf32>
    %87 = arith.mulf %86, %85 : vector<8x32xf32>
    %88 = math.tanh %87 : vector<8x32xf32>
    %cst_17 = arith.constant 1.000000e+00 : f32
    %89 = vector.broadcast %cst_17 : f32 to vector<8x32xf32>
    %90 = arith.addf %88, %89 : vector<8x32xf32>
    %cst_18 = arith.constant 5.000000e-01 : f32
    %91 = vector.broadcast %cst_18 : f32 to vector<8x32xf32>
    %92 = arith.mulf %91, %90 : vector<8x32xf32>
    %93 = arith.addf %83, %92 : vector<8x32xf32>
    %94 = math.tanh %93 : vector<8x32xf32>
    %cst_19 = arith.constant 5.000000e-01 : f32
    %95 = vector.broadcast %cst_19 : f32 to vector<8x32xf32>
    %96 = arith.mulf %95, %72 : vector<8x32xf32>
    %97 = math.tanh %96 : vector<8x32xf32>
    %cst_20 = arith.constant 1.000000e+00 : f32
    %98 = vector.broadcast %cst_20 : f32 to vector<8x32xf32>
    %99 = arith.addf %97, %98 : vector<8x32xf32>
    %cst_21 = arith.constant 5.000000e-01 : f32
    %100 = vector.broadcast %cst_21 : f32 to vector<8x32xf32>
    %101 = arith.mulf %100, %99 : vector<8x32xf32>
    %102 = arith.mulf %94, %101 : vector<8x32xf32>
    %c0_22 = arith.constant 0 : index
    %c0_23 = arith.constant 0 : index
    %103 = vector.load %arg8[%c0_22, %c0_23] : memref<8x32xf32, #tpu.memory_space<vmem>>, vector<8x32xf32>
    tpu.vector_store %arg8[%c0_22, %c0_23], %93 {strides = array<i32>} : memref<8x32xf32, #tpu.memory_space<vmem>>, vector<8x32xf32>,
    %104 = arith.truncf %102 : vector<8x32xf32> to vector<8x32xbf16>
    %c0_24 = arith.constant 0 : index
    %c0_25 = arith.constant 0 : index
    %105 = vector.load %arg9[%c0_24, %c0_25] : memref<8x32xbf16, #tpu.memory_space<vmem>>, vector<8x32xbf16>
    tpu.vector_store %arg9[%c0_24, %c0_25], %104 {strides = array<i32>} : memref<8x32xbf16, #tpu.memory_space<vmem>>, vector<8x32xbf16>,
    return
  }
  func.func @transform_0(%arg0: i32, %arg1: i32) -> (i32, i32) {
    %c0_i32 = arith.constant 0 : i32
    %c0_i32_0 = arith.constant 0 : i32
    return %arg0, %c0_i32 : i32, i32
  }
  func.func @transform_1(%arg0: i32, %arg1: i32) -> (i32, i32) {
    %c0_i32 = arith.constant 0 : i32
    %c0_i32_0 = arith.constant 0 : i32
    return %arg0, %c0_i32 : i32, i32
  }
  func.func @transform_2(%arg0: i32, %arg1: i32) -> (i32, i32) {
    %c0_i32 = arith.constant 0 : i32
    return %arg0, %arg1 : i32, i32
  }
  func.func @transform_3(%arg0: i32, %arg1: i32) -> (i32, i32) {
    %c0_i32 = arith.constant 0 : i32
    %c0_i32_0 = arith.constant 0 : i32
    return %c0_i32, %arg1 : i32, i32
  }
  func.func @transform_4(%arg0: i32, %arg1: i32) -> (i32, i32) {
    %c0_i32 = arith.constant 0 : i32
    %c0_i32_0 = arith.constant 0 : i32
    return %c0_i32, %arg1 : i32, i32
  }
  func.func @transform_5(%arg0: i32, %arg1: i32) -> (i32, i32) {
    %c0_i32 = arith.constant 0 : i32
    %c0_i32_0 = arith.constant 0 : i32
    return %c0_i32, %arg1 : i32, i32
  }
  func.func @transform_6(%arg0: i32, %arg1: i32) -> (i32, i32) {
    %c0_i32 = arith.constant 0 : i32
    return %arg0, %arg1 : i32, i32
  }
  func.func @transform_7(%arg0: i32, %arg1: i32) -> (i32, i32) {
    %c0_i32 = arith.constant 0 : i32
    return %arg0, %arg1 : i32, i32
  }
}

module attributes {stable_mosaic.version = 11 : i64} {
  func.func @_milstm_kernel(%arg0: i32, %arg1: i32, %arg2: memref<8x32xf32, #tpu.memory_space<vmem>>, %arg3: memref<8x32xf32, #tpu.memory_space<vmem>>, %arg4: memref<8x32xf32, #tpu.memory_space<vmem>>, %arg5: memref<32x128xbf16, #tpu.memory_space<vmem>>, %arg6: memref<32x128xbf16, #tpu.memory_space<vmem>>, %arg7: memref<4x128xf32, #tpu.memory_space<vmem>>, %arg8: memref<8x32xf32, #tpu.memory_space<vmem>>, %arg9: memref<8x32xbf16, #tpu.memory_space<vmem>>) attributes {dimension_semantics = [#tpu.dimension_semantics<parallel>, #tpu.dimension_semantics<arbitrary>], iteration_bounds = array<i64: 1, 1>, scalar_prefetch = 0 : i64, scratch_operands = 0 : i64, tpu.core_type = #tpu.core_type<tc>, window_params = [{transform_indices = @transform_0, window_bounds = array<i64: 8, 32>}, {transform_indices = @transform_1, window_bounds = array<i64: 8, 32>}, {transform_indices = @transform_2, window_bounds = array<i64: 8, 32>}, {transform_indices = @transform_3, window_bounds = array<i64: 32, 128>}, {transform_indices = @transform_4, window_bounds = array<i64: 32, 128>}, {transform_indices = @transform_5, window_bounds = array<i64: 4, 128>}, {transform_indices = @transform_6, window_bounds = array<i64: 8, 32>}, {transform_indices = @transform_7, window_bounds = array<i64: 8, 32>}]} {
    %c0 = arith.constant 0 : index
    %c0_0 = arith.constant 0 : index
    %0 = vector.load %arg2[%c0, %c0_0] : memref<8x32xf32, #tpu.memory_space<vmem>>, vector<8x32xf32>
    %1 = arith.truncf %0 : vector<8x32xf32> to vector<8x32xbf16>
    %c0_1 = arith.constant 0 : index
    %c0_2 = arith.constant 0 : index
    %2 = vector.load %arg5[%c0_1, %c0_2] : memref<32x128xbf16, #tpu.memory_space<vmem>>, vector<32x128xbf16>
    %cst = arith.constant dense<0.000000e+00> : vector<8x128xf32>
    %3 = tpu.matmul %1, %2, %cst {dimension_numbers = #tpu.dot_dimension_numbers<[1], [0], [0], [1], [0, 0, 1, 1], [], []>} : vector<8x32xbf16>, vector<32x128xbf16>, vector<8x128xf32> -> vector<8x128xf32>
    %c0_3 = arith.constant 0 : index
    %c0_4 = arith.constant 0 : index
    %4 = vector.load %arg3[%c0_3, %c0_4] : memref<8x32xf32, #tpu.memory_space<vmem>>, vector<8x32xf32>
    %5 = arith.truncf %4 : vector<8x32xf32> to vector<8x32xbf16>
    %c0_5 = arith.constant 0 : index
    %c0_6 = arith.constant 0 : index
    %6 = vector.load %arg6[%c0_5, %c0_6] : memref<32x128xbf16, #tpu.memory_space<vmem>>, vector<32x128xbf16>
    %cst_7 = arith.constant dense<0.000000e+00> : vector<8x128xf32>
    %7 = tpu.matmul %5, %6, %cst_7 {dimension_numbers = #tpu.dot_dimension_numbers<[1], [0], [0], [1], [0, 0, 1, 1], [], []>} : vector<8x32xbf16>, vector<32x128xbf16>, vector<8x128xf32> -> vector<8x128xf32>
    %c0_8 = arith.constant 0 : index
    %c0_9 = arith.constant 0 : index
    %8 = vector.load %arg7[%c0_8, %c0_9] : memref<4x128xf32, #tpu.memory_space<vmem>>, vector<4x128xf32>
    %9 = vector.extract_strided_slice %3 {offsets = [0, 0], sizes = [8, 32], strides = [1, 1]} : vector<8x128xf32> to vector<8x32xf32>
    %10 = vector.extract_strided_slice %7 {offsets = [0, 0], sizes = [8, 32], strides = [1, 1]} : vector<8x128xf32> to vector<8x32xf32>
    %11 = vector.extract_strided_slice %8 {offsets = [0, 0], sizes = [1, 32], strides = [1, 1]} : vector<4x128xf32> to vector<1x32xf32>
    %12 = vector.extract_strided_slice %8 {offsets = [1, 0], sizes = [1, 32], strides = [1, 1]} : vector<4x128xf32> to vector<1x32xf32>
    %13 = vector.extract_strided_slice %8 {offsets = [2, 0], sizes = [1, 32], strides = [1, 1]} : vector<4x128xf32> to vector<1x32xf32>
    %14 = vector.extract_strided_slice %8 {offsets = [3, 0], sizes = [1, 32], strides = [1, 1]} : vector<4x128xf32> to vector<1x32xf32>
    %15 = vector.broadcast %11 : vector<1x32xf32> to vector<8x32xf32>
    %16 = arith.mulf %15, %10 : vector<8x32xf32>
    %17 = vector.broadcast %12 : vector<1x32xf32> to vector<8x32xf32>
    %18 = arith.addf %16, %17 : vector<8x32xf32>
    %19 = arith.mulf %9, %18 : vector<8x32xf32>
    %20 = vector.broadcast %13 : vector<1x32xf32> to vector<8x32xf32>
    %21 = arith.mulf %20, %10 : vector<8x32xf32>
    %22 = vector.broadcast %14 : vector<1x32xf32> to vector<8x32xf32>
    %23 = arith.addf %21, %22 : vector<8x32xf32>
    %24 = arith.addf %19, %23 : vector<8x32xf32>
    %25 = vector.extract_strided_slice %3 {offsets = [0, 32], sizes = [8, 32], strides = [1, 1]} : vector<8x128xf32> to vector<8x32xf32>
    %26 = vector.extract_strided_slice %7 {offsets = [0, 32], sizes = [8, 32], strides = [1, 1]} : vector<8x128xf32> to vector<8x32xf32>
    %27 = vector.extract_strided_slice %8 {offsets = [0, 32], sizes = [1, 32], strides = [1, 1]} : vector<4x128xf32> to vector<1x32xf32>
    %28 = vector.extract_strided_slice %8 {offsets = [1, 32], sizes = [1, 32], strides = [1, 1]} : vector<4x128xf32> to vector<1x32xf32>
    %29 = vector.extract_strided_slice %8 {offsets = [2, 32], sizes = [1, 32], strides = [1, 1]} : vector<4x128xf32> to vector<1x32xf32>
    %30 = vector.extract_strided_slice %8 {offsets = [3, 32], sizes = [1, 32], strides = [1, 1]} : vector<4x128xf32> to vector<1x32xf32>
    %31 = vector.broadcast %27 : vector<1x32xf32> to vector<8x32xf32>
    %32 = arith.mulf %31, %26 : vector<8x32xf32>
    %33 = vector.broadcast %28 : vector<1x32xf32> to vector<8x32xf32>
    %34 = arith.addf %32, %33 : vector<8x32xf32>
    %35 = arith.mulf %25, %34 : vector<8x32xf32>
    %36 = vector.broadcast %29 : vector<1x32xf32> to vector<8x32xf32>
    %37 = arith.mulf %36, %26 : vector<8x32xf32>
    %38 = vector.broadcast %30 : vector<1x32xf32> to vector<8x32xf32>
    %39 = arith.addf %37, %38 : vector<8x32xf32>
    %40 = arith.addf %35, %39 : vector<8x32xf32>
    %41 = vector.extract_strided_slice %3 {offsets = [0, 64], sizes = [8, 32], strides = [1, 1]} : vector<8x128xf32> to vector<8x32xf32>
    %42 = vector.extract_strided_slice %7 {offsets = [0, 64], sizes = [8, 32], strides = [1, 1]} : vector<8x128xf32> to vector<8x32xf32>
    %43 = vector.extract_strided_slice %8 {offsets = [0, 64], sizes = [1, 32], strides = [1, 1]} : vector<4x128xf32> to vector<1x32xf32>
    %44 = vector.extract_strided_slice %8 {offsets = [1, 64], sizes = [1, 32], strides = [1, 1]} : vector<4x128xf32> to vector<1x32xf32>
    %45 = vector.extract_strided_slice %8 {offsets = [2, 64], sizes = [1, 32], strides = [1, 1]} : vector<4x128xf32> to vector<1x32xf32>
    %46 = vector.extract_strided_slice %8 {offsets = [3, 64], sizes = [1, 32], strides = [1, 1]} : vector<4x128xf32> to vector<1x32xf32>
    %47 = vector.broadcast %43 : vector<1x32xf32> to vector<8x32xf32>
    %48 = arith.mulf %47, %42 : vector<8x32xf32>
    %49 = vector.broadcast %44 : vector<1x32xf32> to vector<8x32xf32>
    %50 = arith.addf %48, %49 : vector<8x32xf32>
    %51 = arith.mulf %41, %50 : vector<8x32xf32>
    %52 = vector.broadcast %45 : vector<1x32xf32> to vector<8x32xf32>
    %53 = arith.mulf %52, %42 : vector<8x32xf32>
    %54 = vector.broadcast %46 : vector<1x32xf32> to vector<8x32xf32>
    %55 = arith.addf %53, %54 : vector<8x32xf32>
    %56 = arith.addf %51, %55 : vector<8x32xf32>
    %57 = vector.extract_strided_slice %3 {offsets = [0, 96], sizes = [8, 32], strides = [1, 1]} : vector<8x128xf32> to vector<8x32xf32>
    %58 = vector.extract_strided_slice %7 {offsets = [0, 96], sizes = [8, 32], strides = [1, 1]} : vector<8x128xf32> to vector<8x32xf32>
    %59 = vector.extract_strided_slice %8 {offsets = [0, 96], sizes = [1, 32], strides = [1, 1]} : vector<4x128xf32> to vector<1x32xf32>
    %60 = vector.extract_strided_slice %8 {offsets = [1, 96], sizes = [1, 32], strides = [1, 1]} : vector<4x128xf32> to vector<1x32xf32>
    %61 = vector.extract_strided_slice %8 {offsets = [2, 96], sizes = [1, 32], strides = [1, 1]} : vector<4x128xf32> to vector<1x32xf32>
    %62 = vector.extract_strided_slice %8 {offsets = [3, 96], sizes = [1, 32], strides = [1, 1]} : vector<4x128xf32> to vector<1x32xf32>
    %63 = vector.broadcast %59 : vector<1x32xf32> to vector<8x32xf32>
    %64 = arith.mulf %63, %58 : vector<8x32xf32>
    %65 = vector.broadcast %60 : vector<1x32xf32> to vector<8x32xf32>
    %66 = arith.addf %64, %65 : vector<8x32xf32>
    %67 = arith.mulf %57, %66 : vector<8x32xf32>
    %68 = vector.broadcast %61 : vector<1x32xf32> to vector<8x32xf32>
    %69 = arith.mulf %68, %58 : vector<8x32xf32>
    %70 = vector.broadcast %62 : vector<1x32xf32> to vector<8x32xf32>
    %71 = arith.addf %69, %70 : vector<8x32xf32>
    %72 = arith.addf %67, %71 : vector<8x32xf32>
    %c0_10 = arith.constant 0 : index
    %c0_11 = arith.constant 0 : index
    %73 = vector.load %arg4[%c0_10, %c0_11] : memref<8x32xf32, #tpu.memory_space<vmem>>, vector<8x32xf32>
    %cst_12 = arith.constant 0.000000e+00 : f32
    %74 = vector.broadcast %cst_12 : f32 to vector<8x32xf32>
    %75 = arith.addf %56, %74 : vector<8x32xf32>
    %cst_13 = arith.constant 5.000000e-01 : f32
    %76 = vector.broadcast %cst_13 : f32 to vector<8x32xf32>
    %77 = arith.mulf %76, %75 : vector<8x32xf32>
    %78 = math.tanh %77 : vector<8x32xf32>
    %cst_14 = arith.constant 1.000000e+00 : f32
    %79 = vector.broadcast %cst_14 : f32 to vector<8x32xf32>
    %80 = arith.addf %78, %79 : vector<8x32xf32>
    %cst_15 = arith.constant 5.000000e-01 : f32
    %81 = vector.broadcast %cst_15 : f32 to vector<8x32xf32>
    %82 = arith.mulf %81, %80 : vector<8x32xf32>
    %83 = arith.mulf %73, %82 : vector<8x32xf32>
    %84 = math.tanh %40 : vector<8x32xf32>
    %85 = arith.addf %24, %84 : vector<8x32xf32>
    %cst_16 = arith.constant 5.000000e-01 : f32
    %86 = vector.broadcast %cst_16 : f32 to vector<8x32xf32>
    %87 = arith.mulf %86, %85 : vector<8x32xf32>
    %88 = math.tanh %87 : vector<8x32xf32>
    %cst_17 = arith.constant 1.000000e+00 : f32
    %89 = vector.broadcast %cst_17 : f32 to vector<8x32xf32>
    %90 = arith.addf %88, %89 : vector<8x32xf32>
    %cst_18 = arith.constant 5.000000e-01 : f32
    %91 = vector.broadcast %cst_18 : f32 to vector<8x32xf32>
    %92 = arith.mulf %91, %90 : vector<8x32xf32>
    %93 = arith.addf %83, %92 : vector<8x32xf32>
    %94 = math.tanh %93 : vector<8x32xf32>
    %cst_19 = arith.constant 5.000000e-01 : f32
    %95 = vector.broadcast %cst_19 : f32 to vector<8x32xf32>
    %96 = arith.mulf %95, %72 : vector<8x32xf32>
    %97 = math.tanh %96 : vector<8x32xf32>
    %cst_20 = arith.constant 1.000000e+00 : f32
    %98 = vector.broadcast %cst_20 : f32 to vector<8x32xf32>
    %99 = arith.addf %97, %98 : vector<8x32xf32>
    %cst_21 = arith.constant 5.000000e-01 : f32
    %100 = vector.broadcast %cst_21 : f32 to vector<8x32xf32>
    %101 = arith.mulf %100, %99 : vector<8x32xf32>
    %102 = arith.mulf %94, %101 : vector<8x32xf32>
    %c0_22 = arith.constant 0 : index
    %c0_23 = arith.constant 0 : index
    %103 = vector.load %arg8[%c0_22, %c0_23] : memref<8x32xf32, #tpu.memory_space<vmem>>, vector<8x32xf32>
    tpu.vector_store %arg8[%c0_22, %c0_23], %93 {strides = array<i32>} : memref<8x32xf32, #tpu.memory_space<vmem>>, vector<8x32xf32>,
    %104 = arith.truncf %102 : vector<8x32xf32> to vector<8x32xbf16>
    %c0_24 = arith.constant 0 : index
    %c0_25 = arith.constant 0 : index
    %105 = vector.load %arg9[%c0_24, %c0_25] : memref<8x32xbf16, #tpu.memory_space<vmem>>, vector<8x32xbf16>
    tpu.vector_store %arg9[%c0_24, %c0_25], %104 {strides = array<i32>} : memref<8x32xbf16, #tpu.memory_space<vmem>>, vector<8x32xbf16>,
    return
  }
  func.func @transform_0(%arg0: i32, %arg1: i32) -> (i32, i32) {
    %c0_i32 = arith.constant 0 : i32
    %c0_i32_0 = arith.constant 0 : i32
    return %arg0, %c0_i32 : i32, i32
  }
  func.func @transform_1(%arg0: i32, %arg1: i32) -> (i32, i32) {
    %c0_i32 = arith.constant 0 : i32
    %c0_i32_0 = arith.constant 0 : i32
    return %arg0, %c0_i32 : i32, i32
  }
  func.func @transform_2(%arg0: i32, %arg1: i32) -> (i32, i32) {
    %c0_i32 = arith.constant 0 : i32
    return %arg0, %arg1 : i32, i32
  }
  func.func @transform_3(%arg0: i32, %arg1: i32) -> (i32, i32) {
    %c0_i32 = arith.constant 0 : i32
    %c0_i32_0 = arith.constant 0 : i32
    return %c0_i32, %arg1 : i32, i32
  }
  func.func @transform_4(%arg0: i32, %arg1: i32) -> (i32, i32) {
    %c0_i32 = arith.constant 0 : i32
    %c0_i32_0 = arith.constant 0 : i32
    return %c0_i32, %arg1 : i32, i32
  }
  func.func @transform_5(%arg0: i32, %arg1: i32) -> (i32, i32) {
    %c0_i32 = arith.constant 0 : i32
    %c0_i32_0 = arith.constant 0 : i32
    return %c0_i32, %arg1 : i32, i32
  }
  func.func @transform_6(%arg0: i32, %arg1: i32) -> (i32, i32) {
    %c0_i32 = arith.constant 0 : i32
    return %arg0, %arg1 : i32, i32
  }
  func.func @transform_7(%arg0: i32, %arg1: i32) -> (i32, i32) {
    %c0_i32 = arith.constant 0 : i32
    return %arg0, %arg1 : i32, i32
  }
}

</mosaic_0001>

<bundles_post_ra>
// kernel: tpu_custom_call.1
= control target key start
LH: loop header
LB: loop body
LE: loop exit
PB: predicated region body
PF: predicated region fallthrough
CT: control target
= control target key end

     0   :  { %13 = vsyncpa [#allocation3], 0  ;;  %s593_s0 = inlined_call_operand.hbm [shape: f32[8,32], index: 0, kind: input, shape index: {}]   ;;  %s594_s1 = inlined_call_operand.hbm [shape: f32[8,32], index: 1, kind: input, shape index: {}]   ;;  %s595_s2 = inlined_call_operand.hbm [shape: f32[8,32], index: 2, kind: input, shape index: {}]   ;;  %s596_s3 = inlined_call_operand.hbm [shape: bf16[32,128], index: 3, kind: input, shape index: {}]   ;;  %s597_s4 = inlined_call_operand.hbm [shape: bf16[32,128], index: 4, kind: input, shape index: {}]   ;;  %s598_s5 = inlined_call_operand.vmem [shape: f32[4,128], index: 5, kind: input, shape index: {}]   ;;  %s599_s6 = inlined_call_operand.hbm [shape: f32[8,32], index: 6, kind: output, shape index: {0}]   ;;  %s600_s7 = inlined_call_operand.hbm [shape: bf16[8,32], index: 7, kind: output, shape index: {1}]  }
   0x1   :  { %14 = vsyncpa [#allocation6], 0 }
   0x2   :  { %15 = vsyncpa [#allocation9], 0 }
   0x3   :  { %16 = vsyncpa [#allocation4], 0 }
   0x4   :  { %17 = vsyncpa [#allocation13], 0  ;;  %s506_s24 = smov [#allocation5]   ;;  %s507_s26 = smov [#allocation8]  }
   0x5   :  { %s34_s25 = sshll.u32 %s506_s24, 4  ;;  %s53_s27 = sshll.u32 %s507_s26, 4  ;;  %s35_s25 = int_to_ptr.vmem [resolvable:$true] %s34_s25  ;;  %s54_s27 = int_to_ptr.vmem [resolvable:$true] %s53_s27 }
   0x6   :  { %s364_s28 = scalar_lea.vmem %s35_s25, 128  ;;  %p369_p1 = scmp.lt.s32.totalorder %s35_s25, %s35_s25 }
   0x7   :  { %p365_p0 = scmp.ne.s32.totalorder %s35_s25, %s364_s28  ;;  %p370_p2 = scmp.lt.s32.totalorder %s364_s28, %s364_s28 }
   0x9   :  { %p371_p3 = por %p370_p2, %p369_p1 }
   0xb   :  { %p372_p4 = pnand %p371_p3, %p365_p0 }
   0xd   :  { %375 = shalt.err (!%p372_p4)
}
   0xe   :  { %37 = dma.hbm_to_vmem [thread:$0]  %s594_s1, 128, %s35_s25, [#allocation6]  }
   0xf   :  { %s384_s8 = scalar_lea.vmem %s54_s27, 256  ;;  %p389_p6 = scmp.lt.s32.totalorder %s54_s27, %s54_s27 }
  0x10   :  { %p385_p5 = scmp.ne.s32.totalorder %s54_s27, %s384_s8  ;;  %p390_p7 = scmp.lt.s32.totalorder %s384_s8, %s384_s8 }
  0x12   :  { %p391_p8 = por %p390_p7, %p389_p6 }
  0x14   :  { %p392_p9 = pnand %p391_p8, %p385_p5 }
  0x16   :  { %395 = shalt.err (!%p392_p9)
}
  0x17   :  { %s508_s9 = smov 64   ;;  %s509_s10 = smov 4  }
  0x18   :  { %59 = dma.hbm_to_vmem [thread:$0]  %s596_s3, 256, %s54_s27, [#allocation9], %s508_s9, %s508_s9, %s509_s10  }
  0x19   :  { %s510_s13 = smov [#allocation2]   ;;  %s511_s15 = smov [#allocation7]  }
  0x1a   :  { %s24_s14 = sshll.u32 %s510_s13, 4  ;;  %s44_s1 = sshll.u32 %s511_s15, 4  ;;  %s25_s14 = int_to_ptr.vmem [resolvable:$true] %s24_s14  ;;  %s45_s1 = int_to_ptr.vmem [resolvable:$true] %s44_s1 }
  0x1b   :  { %s404_s16 = scalar_lea.vmem %s25_s14, 128  ;;  %p409_p11 = scmp.lt.s32.totalorder %s25_s14, %s25_s14 }
  0x1c   :  { %p405_p10 = scmp.ne.s32.totalorder %s25_s14, %s404_s16  ;;  %p410_p12 = scmp.lt.s32.totalorder %s404_s16, %s404_s16 }
  0x1e   :  { %p411_p13 = por %p410_p12, %p409_p11 }
  0x20   :  { %p412_p0 = pnand %p411_p13, %p405_p10 }
  0x22   :  { %415 = shalt.err (!%p412_p0)
}
  0x23   :  { %27 = dma.hbm_to_vmem [thread:$0]  %s593_s0, 128, %s25_s14, [#allocation3]  }
  0x24   :  { %s424_s19 = scalar_lea.vmem %s45_s1, 128  ;;  %p429_p2 = scmp.lt.s32.totalorder %s45_s1, %s45_s1 }
  0x25   :  { %p425_p1 = scmp.ne.s32.totalorder %s45_s1, %s424_s19  ;;  %p430_p3 = scmp.lt.s32.totalorder %s424_s19, %s424_s19 }
  0x27   :  { %p431_p4 = por %p430_p3, %p429_p2 }
  0x29   :  { %p432_p5 = pnand %p431_p4, %p425_p1 }
  0x2b   :  { %435 = shalt.err (!%p432_p5)
}
  0x2c   :  { %47 = dma.hbm_to_vmem [thread:$0]  %s595_s2, 128, %s45_s1, [#allocation6]  }
  0x2d   :  { %s512_s21 = smov [#allocation10]  }
  0x2e   :  { %s65_s22 = sshll.u32 %s512_s21, 4  ;;  %s66_s22 = int_to_ptr.vmem [resolvable:$true] %s65_s22 }
  0x2f   :  { %s444_s23 = scalar_lea.vmem %s66_s22, 256  ;;  %p449_p7 = scmp.lt.s32.totalorder %s66_s22, %s66_s22 }
  0x30   :  { %p445_p6 = scmp.ne.s32.totalorder %s66_s22, %s444_s23  ;;  %p450_p8 = scmp.lt.s32.totalorder %s444_s23, %s444_s23 }
  0x32   :  { %p451_p9 = por %p450_p8, %p449_p7 }
  0x34   :  { %p452_p10 = pnand %p451_p9, %p445_p6 }
  0x36   :  { %455 = shalt.err (!%p452_p10)
}
  0x37   :  { %71 = dma.hbm_to_vmem [thread:$0]  %s597_s4, 256, %s66_s22, [#allocation9], %s508_s9, %s508_s9, %s509_s10  }
  0x38   :  { %496 = dma.done.wait [#allocation3], 128  }
  0x39   :  { %497 = vsyncadd [#allocation3], 4294967168 }
  0x3a   :  { %498 = dma.done.wait [#allocation6], 256  }
  0x3b   :  { %499 = vsyncadd [#allocation6], 4294967040 }
  0x3c   :  { %500 = dma.done.wait [#allocation9], 512  }
  0x3d   :  { %501 = vsyncadd [#allocation9], 4294966784  ;;  %v513_v0 = vmov 0.0   ;;  %vm514_vm0 = vmmov 0   ;;  %v344_v1 = vld [vmem:[#allocation8 + $0x8] sm:$0xff]   ;;  %v345_v2 = vld [vmem:[#allocation10 + $0x8] sm:$0xff]   ;;  %v214_v9 = vlaneseq }
  0x3e   :  { %315 = vmatprep.subr.bf16.mxu0 %v513_v0  ;;  %323 = vmatprep.subr.bf16.mxu1 %v513_v0  ;;  %v346_v3 = vld [vmem:[#allocation8] sm:$0xff]   ;;  %v347_v4 = vld [vmem:[#allocation10] sm:$0xff]   ;;  %v90_v5 = vld [vmem:[#allocation2] sm:$0xff]  ;;  %vm108_vm1 = vcmask 261120   ;;  %s516_s25 = smov 32   ;;  %s517_s26 = smov [#allocation11]  }
  0x3f   :  { %319 = vmatprep.mubr.msk.bf16.mxu0 %vm514_vm0, %v513_v0  ;;  %327 = vmatprep.mubr.msk.bf16.mxu1 %vm514_vm0, %v513_v0  ;;  %v152_v6 = vld [vmem:[#allocation5] sm:$0xff]  ;;  %v91_v7 = vpack.c.bf16 %v90_v5, %v90_v5  ;;  %v215_v10 = vshrl.u32 %v214_v9, 7  ;;  %v213_v13 = vld [vmem:[%s598_s5] sm:$0xf]  ;;  %s515_s5 = smov 96   ;;  %v236_v43 = vld [vmem:[#allocation7] sm:$0xff] }
  0x40   :  { %316 = vmatpush3.bf16.msra.mxu0 %v344_v1  ;;  %324 = vmatpush3.bf16.msra.mxu1 %v345_v2  ;;  %v153_v8 = vpack.c.bf16 %v152_v6, %v152_v6  ;;  %s278_s27 = sshll.u32 %s517_s26, 4  ;;  %s279_s27 = int_to_ptr.vmem [resolvable:$true] %s278_s27 }
  0x41   :  { %317 = vmatprep.subr.bf16.mxu0 %v513_v0  ;;  %325 = vmatprep.subr.bf16.mxu1 %v513_v0  ;;  %v216_v11 = vsub.s32 0, %v215_v10  ;;  %v227_v12 = vsub.s32 2, %v215_v10  ;;  %v221_v14 = vsub.s32 1, %v215_v10  ;;  %v232_v17 = vsub.s32 3, %v215_v10  ;;  %s456_s28 = scalar_lea.vmem %s279_s27, 128  ;;  %p461_p12 = scmp.lt.s32.totalorder %s279_s27, %s279_s27 }
  0x42   :  { %p457_p11 = scmp.ne.s32.totalorder %s279_s27, %s456_s28  ;;  %p462_p13 = scmp.lt.s32.totalorder %s456_s28, %s456_s28 }
  0x43   :  { %v217_v15 = vrot.slane %v213_v13, %v216_v11  ;;  %v228_v16 = vrot.slane %v213_v13, %v227_v12  ;;  %v222_v19 = vrot.slane %v213_v13, %v221_v14  ;;  %v233_v23 = vrot.slane %v213_v13, %v232_v17 }
  0x44   :  { %318 = vmatpush3.bf16.msra.mxu0 %v346_v3  ;;  %326 = vmatpush3.bf16.msra.mxu1 %v347_v4  ;;  %p463_p0 = por %p462_p13, %p461_p12 }
  0x46   :  { %p464_p1 = pnand %p463_p0, %p457_p11 }
  0x47   :  { %320 = vmatmul.mubr.msk.bf16.vlgmr.msra.gmra.mxu0 %vm108_vm1, %v91_v7  ;;  %328 = vmatmul.mubr.msk.bf16.vlgmr.msra.gmra.mxu1 %vm108_vm1, %v153_v8 }
 0x107   :  { %v146_v18 = vpop.f32.mrf.mxu0  ;;  %v207_v20 = vpop.f32.mrf.mxu1 }
 0x108   :  { %v218_v21 = vmul.f32 %v217_v15, %v207_v20  ;;  %v229_v22 = vmul.f32 %v228_v16, %v207_v20 }
 0x109   :  { %v321_v24 = vpop.f32.mrf.mxu0  ;;  %v329_v25 = vpop.f32.mrf.mxu1 }
 0x10a   :  { %v223_v26 = vadd.f32 %v222_v19, %v218_v21  ;;  %v234_v30 = vadd.f32 %v233_v23, %v229_v22 }
 0x10b   :  { %v149_v27 = vpop.f32.mrf.mxu0  ;;  %v210_v28 = vpop.f32.mrf.mxu1 }
 0x10c   :  { %v224_v29 = vmul.f32 %v223_v26, %v146_v18 }
 0x10d   :  { %v322_v31 = vpop.f32.mrf.mxu0  ;;  %v330_v32 = vpop.f32.mrf.mxu1 }
 0x10e   :  { %v235_v33 = vadd.f32 %v234_v30, %v224_v29 }
 0x110   :  { %348 = vtanh.f32 %v235_v33  ;;  %v238_v34 = vmul.f32 0.5, %v235_v33 }
 0x112   :  { %350 = vtanh.f32 %v238_v34 }
 0x11d   :  { %v349_v35 = vpop.eup %348 }
 0x11e   :  { %249 = vrot.lane.b32.xlu0 %v349_v35, %s515_s5 }
 0x11f   :  { %v351_v36 = vpop.eup %350 }
 0x120   :  { %v240_v37 = vadd.f32 1.0, %v351_v36 }
 0x122   :  { %v241_v38 = vmul.f32 0.5, %v240_v37 }
 0x124   :  { %264 = vrot.lane.b32.xlu1 %v241_v38, %s516_s25  ;;  %243 = vrot.lane.b32.xlu0 %v241_v38, %s508_s9 }
 0x190   :  { %v250_v39 = vpop.permute.xlu0 %249 }
 0x191   :  { %v252_v40 = vadd.f32 %v250_v39, %v235_v33 }
 0x193   :  { %v253_v41 = vmul.f32 0.5, %v252_v40 }
 0x195   :  { %352 = vtanh.f32 %v253_v41 }
 0x196   :  { %v244_v44 = vpop.permute.xlu0 %243 }
 0x197   :  { %v246_v47 = vmul.f32 %v244_v44, %v236_v43 }
 0x1a2   :  { %v353_v42 = vpop.eup %352 }
 0x1a3   :  { %v255_v45 = vadd.f32 1.0, %v353_v42 }
 0x1a5   :  { %v256_v46 = vmul.f32 0.5, %v255_v45 }
 0x1a7   :  { %v257_v48 = vadd.f32 %v256_v46, %v246_v47 }
 0x1a9   :  { %354 = vtanh.f32 %v257_v48  ;;  %268 = vst.msk [vmem:[#allocation11] sm:$0xff] %vm108_vm1, %v257_v48 }
 0x1aa   :  { %467 = shalt.err (!%p464_p1)
}
 0x1ab   :  { %281 = dma.vmem_to_hbm [thread:$0]  %s279_s27, 128, %s599_s6, [#allocation4]   ;;  %v265_v50 = vpop.permute.xlu1 %264  ;;  %vm270_vm2 = vcmask 257024  }
 0x1ac   :  { %s518_s8 = smov [#allocation12]  }
 0x1ad   :  { %s288_s9 = sshll.u32 %s518_s8, 4  ;;  %s289_s9 = int_to_ptr.vmem [resolvable:$true] %s288_s9 }
 0x1ae   :  { %s476_s10 = scalar_lea.vmem %s289_s9, 64  ;;  %p481_p3 = scmp.lt.s32.totalorder %s289_s9, %s289_s9 }
 0x1af   :  { %p477_p2 = scmp.ne.s32.totalorder %s289_s9, %s476_s10  ;;  %p482_p4 = scmp.lt.s32.totalorder %s476_s10, %s476_s10 }
 0x1b1   :  { %p483_p5 = por %p482_p4, %p481_p3 }
 0x1b3   :  { %p484_p6 = pnand %p483_p5, %p477_p2 }
 0x1b6   :  { %v355_v49 = vpop.eup %354 }
 0x1b7   :  { %v267_v51 = vmul.f32 %v355_v49, %v265_v50 }
 0x1b9   :  { %v269_v52 = vpack.c.bf16 %v267_v51, %v267_v51 }
 0x1bb   :  { %271 = vst.msk [vmem:[#allocation12] sm:$0xf] %vm270_vm2, %v269_v52 }
 0x1bc   :  { %487 = shalt.err (!%p484_p6)
}
 0x1bd   :  { %291 = dma.vmem_to_hbm [thread:$0]  %s289_s9, 64, %s600_s7, [#allocation13]  }
 0x1be   :  { %502 = dma.done.wait [#allocation4], 128  }
 0x1bf   :  { %503 = vsyncadd [#allocation4], 4294967168 }
 0x1c0   :  { %504 = dma.done.wait [#allocation13], 64  }
 0x1c1   :  { %505 = vsyncadd [#allocation13], 4294967232 }
 0x1c2   :  { %298 = vsyncpa [#allocation3], 1 }
 0x1c3   :  { %299 = vsyncpa [#allocation6], 1 }
 0x1c4   :  { %300 = vsyncpa [#allocation9], 1 }
 0x1c5   :  { %301 = vsyncpa [#allocation4], 1 }
 0x1c6   :  { %302 = vsyncpa [#allocation13], 1 }

// kernel: tpu_custom_call.1
= control target key start
LH: loop header
LB: loop body
LE: loop exit
PB: predicated region body
PF: predicated region fallthrough
CT: control target
= control target key end

     0   :  { %13 = vsyncpa [#allocation3], 0  ;;  %s593_s0 = inlined_call_operand.hbm [shape: f32[8,32], index: 0, kind: input, shape index: {}]   ;;  %s594_s1 = inlined_call_operand.hbm [shape: f32[8,32], index: 1, kind: input, shape index: {}]   ;;  %s595_s2 = inlined_call_operand.hbm [shape: f32[8,32], index: 2, kind: input, shape index: {}]   ;;  %s596_s3 = inlined_call_operand.hbm [shape: bf16[32,128], index: 3, kind: input, shape index: {}]   ;;  %s597_s4 = inlined_call_operand.hbm [shape: bf16[32,128], index: 4, kind: input, shape index: {}]   ;;  %s598_s5 = inlined_call_operand.vmem [shape: f32[4,128], index: 5, kind: input, shape index: {}]   ;;  %s599_s6 = inlined_call_operand.hbm [shape: f32[8,32], index: 6, kind: output, shape index: {0}]   ;;  %s600_s7 = inlined_call_operand.hbm [shape: bf16[8,32], index: 7, kind: output, shape index: {1}]  }
   0x1   :  { %14 = vsyncpa [#allocation6], 0 }
   0x2   :  { %15 = vsyncpa [#allocation9], 0 }
   0x3   :  { %16 = vsyncpa [#allocation4], 0 }
   0x4   :  { %17 = vsyncpa [#allocation13], 0  ;;  %s506_s24 = smov [#allocation5]   ;;  %s507_s26 = smov [#allocation8]  }
   0x5   :  { %s34_s25 = sshll.u32 %s506_s24, 4  ;;  %s53_s27 = sshll.u32 %s507_s26, 4  ;;  %s35_s25 = int_to_ptr.vmem [resolvable:$true] %s34_s25  ;;  %s54_s27 = int_to_ptr.vmem [resolvable:$true] %s53_s27 }
   0x6   :  { %s364_s28 = scalar_lea.vmem %s35_s25, 128  ;;  %p369_p1 = scmp.lt.s32.totalorder %s35_s25, %s35_s25 }
   0x7   :  { %p365_p0 = scmp.ne.s32.totalorder %s35_s25, %s364_s28  ;;  %p370_p2 = scmp.lt.s32.totalorder %s364_s28, %s364_s28 }
   0x9   :  { %p371_p3 = por %p370_p2, %p369_p1 }
   0xb   :  { %p372_p4 = pnand %p371_p3, %p365_p0 }
   0xd   :  { %375 = shalt.err (!%p372_p4)
}
   0xe   :  { %37 = dma.hbm_to_vmem [thread:$0]  %s594_s1, 128, %s35_s25, [#allocation6]  }
   0xf   :  { %s384_s8 = scalar_lea.vmem %s54_s27, 256  ;;  %p389_p6 = scmp.lt.s32.totalorder %s54_s27, %s54_s27 }
  0x10   :  { %p385_p5 = scmp.ne.s32.totalorder %s54_s27, %s384_s8  ;;  %p390_p7 = scmp.lt.s32.totalorder %s384_s8, %s384_s8 }
  0x12   :  { %p391_p8 = por %p390_p7, %p389_p6 }
  0x14   :  { %p392_p9 = pnand %p391_p8, %p385_p5 }
  0x16   :  { %395 = shalt.err (!%p392_p9)
}
  0x17   :  { %s508_s9 = smov 64   ;;  %s509_s10 = smov 4  }
  0x18   :  { %59 = dma.hbm_to_vmem [thread:$0]  %s596_s3, 256, %s54_s27, [#allocation9], %s508_s9, %s508_s9, %s509_s10  }
  0x19   :  { %s510_s13 = smov [#allocation2]   ;;  %s511_s15 = smov [#allocation7]  }
  0x1a   :  { %s24_s14 = sshll.u32 %s510_s13, 4  ;;  %s44_s1 = sshll.u32 %s511_s15, 4  ;;  %s25_s14 = int_to_ptr.vmem [resolvable:$true] %s24_s14  ;;  %s45_s1 = int_to_ptr.vmem [resolvable:$true] %s44_s1 }
  0x1b   :  { %s404_s16 = scalar_lea.vmem %s25_s14, 128  ;;  %p409_p11 = scmp.lt.s32.totalorder %s25_s14, %s25_s14 }
  0x1c   :  { %p405_p10 = scmp.ne.s32.totalorder %s25_s14, %s404_s16  ;;  %p410_p12 = scmp.lt.s32.totalorder %s404_s16, %s404_s16 }
  0x1e   :  { %p411_p13 = por %p410_p12, %p409_p11 }
  0x20   :  { %p412_p0 = pnand %p411_p13, %p405_p10 }
  0x22   :  { %415 = shalt.err (!%p412_p0)
}
  0x23   :  { %27 = dma.hbm_to_vmem [thread:$0]  %s593_s0, 128, %s25_s14, [#allocation3]  }
  0x24   :  { %s424_s19 = scalar_lea.vmem %s45_s1, 128  ;;  %p429_p2 = scmp.lt.s32.totalorder %s45_s1, %s45_s1 }
  0x25   :  { %p425_p1 = scmp.ne.s32.totalorder %s45_s1, %s424_s19  ;;  %p430_p3 = scmp.lt.s32.totalorder %s424_s19, %s424_s19 }
  0x27   :  { %p431_p4 = por %p430_p3, %p429_p2 }
  0x29   :  { %p432_p5 = pnand %p431_p4, %p425_p1 }
  0x2b   :  { %435 = shalt.err (!%p432_p5)
}
  0x2c   :  { %47 = dma.hbm_to_vmem [thread:$0]  %s595_s2, 128, %s45_s1, [#allocation6]  }
  0x2d   :  { %s512_s21 = smov [#allocation10]  }
  0x2e   :  { %s65_s22 = sshll.u32 %s512_s21, 4  ;;  %s66_s22 = int_to_ptr.vmem [resolvable:$true] %s65_s22 }
  0x2f   :  { %s444_s23 = scalar_lea.vmem %s66_s22, 256  ;;  %p449_p7 = scmp.lt.s32.totalorder %s66_s22, %s66_s22 }
  0x30   :  { %p445_p6 = scmp.ne.s32.totalorder %s66_s22, %s444_s23  ;;  %p450_p8 = scmp.lt.s32.totalorder %s444_s23, %s444_s23 }
  0x32   :  { %p451_p9 = por %p450_p8, %p449_p7 }
  0x34   :  { %p452_p10 = pnand %p451_p9, %p445_p6 }
  0x36   :  { %455 = shalt.err (!%p452_p10)
}
  0x37   :  { %71 = dma.hbm_to_vmem [thread:$0]  %s597_s4, 256, %s66_s22, [#allocation9], %s508_s9, %s508_s9, %s509_s10  }
  0x38   :  { %496 = dma.done.wait [#allocation3], 128  }
  0x39   :  { %497 = vsyncadd [#allocation3], 4294967168 }
  0x3a   :  { %498 = dma.done.wait [#allocation6], 256  }
  0x3b   :  { %499 = vsyncadd [#allocation6], 4294967040 }
  0x3c   :  { %500 = dma.done.wait [#allocation9], 512  }
  0x3d   :  { %501 = vsyncadd [#allocation9], 4294966784  ;;  %v513_v0 = vmov 0.0   ;;  %vm514_vm0 = vmmov 0   ;;  %v344_v1 = vld [vmem:[#allocation8 + $0x8] sm:$0xff]   ;;  %v345_v2 = vld [vmem:[#allocation10 + $0x8] sm:$0xff]   ;;  %v214_v9 = vlaneseq }
  0x3e   :  { %315 = vmatprep.subr.bf16.mxu0 %v513_v0  ;;  %323 = vmatprep.subr.bf16.mxu1 %v513_v0  ;;  %v346_v3 = vld [vmem:[#allocation8] sm:$0xff]   ;;  %v347_v4 = vld [vmem:[#allocation10] sm:$0xff]   ;;  %v90_v5 = vld [vmem:[#allocation2] sm:$0xff]  ;;  %vm108_vm1 = vcmask 261120   ;;  %s516_s25 = smov 32   ;;  %s517_s26 = smov [#allocation11]  }
  0x3f   :  { %319 = vmatprep.mubr.msk.bf16.mxu0 %vm514_vm0, %v513_v0  ;;  %327 = vmatprep.mubr.msk.bf16.mxu1 %vm514_vm0, %v513_v0  ;;  %v152_v6 = vld [vmem:[#allocation5] sm:$0xff]  ;;  %v91_v7 = vpack.c.bf16 %v90_v5, %v90_v5  ;;  %v215_v10 = vshrl.u32 %v214_v9, 7  ;;  %v213_v13 = vld [vmem:[%s598_s5] sm:$0xf]  ;;  %s515_s5 = smov 96   ;;  %v236_v43 = vld [vmem:[#allocation7] sm:$0xff] }
  0x40   :  { %316 = vmatpush3.bf16.msra.mxu0 %v344_v1  ;;  %324 = vmatpush3.bf16.msra.mxu1 %v345_v2  ;;  %v153_v8 = vpack.c.bf16 %v152_v6, %v152_v6  ;;  %s278_s27 = sshll.u32 %s517_s26, 4  ;;  %s279_s27 = int_to_ptr.vmem [resolvable:$true] %s278_s27 }
  0x41   :  { %317 = vmatprep.subr.bf16.mxu0 %v513_v0  ;;  %325 = vmatprep.subr.bf16.mxu1 %v513_v0  ;;  %v216_v11 = vsub.s32 0, %v215_v10  ;;  %v227_v12 = vsub.s32 2, %v215_v10  ;;  %v221_v14 = vsub.s32 1, %v215_v10  ;;  %v232_v17 = vsub.s32 3, %v215_v10  ;;  %s456_s28 = scalar_lea.vmem %s279_s27, 128  ;;  %p461_p12 = scmp.lt.s32.totalorder %s279_s27, %s279_s27 }
  0x42   :  { %p457_p11 = scmp.ne.s32.totalorder %s279_s27, %s456_s28  ;;  %p462_p13 = scmp.lt.s32.totalorder %s456_s28, %s456_s28 }
  0x43   :  { %v217_v15 = vrot.slane %v213_v13, %v216_v11  ;;  %v228_v16 = vrot.slane %v213_v13, %v227_v12  ;;  %v222_v19 = vrot.slane %v213_v13, %v221_v14  ;;  %v233_v23 = vrot.slane %v213_v13, %v232_v17 }
  0x44   :  { %318 = vmatpush3.bf16.msra.mxu0 %v346_v3  ;;  %326 = vmatpush3.bf16.msra.mxu1 %v347_v4  ;;  %p463_p0 = por %p462_p13, %p461_p12 }
  0x46   :  { %p464_p1 = pnand %p463_p0, %p457_p11 }
  0x47   :  { %320 = vmatmul.mubr.msk.bf16.vlgmr.msra.gmra.mxu0 %vm108_vm1, %v91_v7  ;;  %328 = vmatmul.mubr.msk.bf16.vlgmr.msra.gmra.mxu1 %vm108_vm1, %v153_v8 }
 0x107   :  { %v146_v18 = vpop.f32.mrf.mxu0  ;;  %v207_v20 = vpop.f32.mrf.mxu1 }
 0x108   :  { %v218_v21 = vmul.f32 %v217_v15, %v207_v20  ;;  %v229_v22 = vmul.f32 %v228_v16, %v207_v20 }
 0x109   :  { %v321_v24 = vpop.f32.mrf.mxu0  ;;  %v329_v25 = vpop.f32.mrf.mxu1 }
 0x10a   :  { %v223_v26 = vadd.f32 %v222_v19, %v218_v21  ;;  %v234_v30 = vadd.f32 %v233_v23, %v229_v22 }
 0x10b   :  { %v149_v27 = vpop.f32.mrf.mxu0  ;;  %v210_v28 = vpop.f32.mrf.mxu1 }
 0x10c   :  { %v224_v29 = vmul.f32 %v223_v26, %v146_v18 }
 0x10d   :  { %v322_v31 = vpop.f32.mrf.mxu0  ;;  %v330_v32 = vpop.f32.mrf.mxu1 }
 0x10e   :  { %v235_v33 = vadd.f32 %v234_v30, %v224_v29 }
 0x110   :  { %348 = vtanh.f32 %v235_v33  ;;  %v238_v34 = vmul.f32 0.5, %v235_v33 }
 0x112   :  { %350 = vtanh.f32 %v238_v34 }
 0x11d   :  { %v349_v35 = vpop.eup %348 }
 0x11e   :  { %249 = vrot.lane.b32.xlu0 %v349_v35, %s515_s5 }
 0x11f   :  { %v351_v36 = vpop.eup %350 }
 0x120   :  { %v240_v37 = vadd.f32 1.0, %v351_v36 }
 0x122   :  { %v241_v38 = vmul.f32 0.5, %v240_v37 }
 0x124   :  { %264 = vrot.lane.b32.xlu1 %v241_v38, %s516_s25  ;;  %243 = vrot.lane.b32.xlu0 %v241_v38, %s508_s9 }
 0x190   :  { %v250_v39 = vpop.permute.xlu0 %249 }
 0x191   :  { %v252_v40 = vadd.f32 %v250_v39, %v235_v33 }
 0x193   :  { %v253_v41 = vmul.f32 0.5, %v252_v40 }
 0x195   :  { %352 = vtanh.f32 %v253_v41 }
 0x196   :  { %v244_v44 = vpop.permute.xlu0 %243 }
 0x197   :  { %v246_v47 = vmul.f32 %v244_v44, %v236_v43 }
 0x1a2   :  { %v353_v42 = vpop.eup %352 }
 0x1a3   :  { %v255_v45 = vadd.f32 1.0, %v353_v42 }
 0x1a5   :  { %v256_v46 = vmul.f32 0.5, %v255_v45 }
 0x1a7   :  { %v257_v48 = vadd.f32 %v256_v46, %v246_v47 }
 0x1a9   :  { %354 = vtanh.f32 %v257_v48  ;;  %268 = vst.msk [vmem:[#allocation11] sm:$0xff] %vm108_vm1, %v257_v48 }
 0x1aa   :  { %467 = shalt.err (!%p464_p1)
}
 0x1ab   :  { %281 = dma.vmem_to_hbm [thread:$0]  %s279_s27, 128, %s599_s6, [#allocation4]   ;;  %v265_v50 = vpop.permute.xlu1 %264  ;;  %vm270_vm2 = vcmask 257024  }
 0x1ac   :  { %s518_s8 = smov [#allocation12]  }
 0x1ad   :  { %s288_s9 = sshll.u32 %s518_s8, 4  ;;  %s289_s9 = int_to_ptr.vmem [resolvable:$true] %s288_s9 }
 0x1ae   :  { %s476_s10 = scalar_lea.vmem %s289_s9, 64  ;;  %p481_p3 = scmp.lt.s32.totalorder %s289_s9, %s289_s9 }
 0x1af   :  { %p477_p2 = scmp.ne.s32.totalorder %s289_s9, %s476_s10  ;;  %p482_p4 = scmp.lt.s32.totalorder %s476_s10, %s476_s10 }
 0x1b1   :  { %p483_p5 = por %p482_p4, %p481_p3 }
 0x1b3   :  { %p484_p6 = pnand %p483_p5, %p477_p2 }
 0x1b6   :  { %v355_v49 = vpop.eup %354 }
 0x1b7   :  { %v267_v51 = vmul.f32 %v355_v49, %v265_v50 }
 0x1b9   :  { %v269_v52 = vpack.c.bf16 %v267_v51, %v267_v51 }
 0x1bb   :  { %271 = vst.msk [vmem:[#allocation12] sm:$0xf] %vm270_vm2, %v269_v52 }
 0x1bc   :  { %487 = shalt.err (!%p484_p6)
}
 0x1bd   :  { %291 = dma.vmem_to_hbm [thread:$0]  %s289_s9, 64, %s600_s7, [#allocation13]  }
 0x1be   :  { %502 = dma.done.wait [#allocation4], 128  }
 0x1bf   :  { %503 = vsyncadd [#allocation4], 4294967168 }
 0x1c0   :  { %504 = dma.done.wait [#allocation13], 64  }
 0x1c1   :  { %505 = vsyncadd [#allocation13], 4294967232 }
 0x1c2   :  { %298 = vsyncpa [#allocation3], 1 }
 0x1c3   :  { %299 = vsyncpa [#allocation6], 1 }
 0x1c4   :  { %300 = vsyncpa [#allocation9], 1 }
 0x1c5   :  { %301 = vsyncpa [#allocation4], 1 }
 0x1c6   :  { %302 = vsyncpa [#allocation13], 1 }

</bundles_post_ra>
